<compile_context>
chip_gen: v5e
topology: v5e:2x2
jax: 0.10.0
libtpu: 0.0.40
codegen_flags: <defaults>
</compile_context>

<pallas_src>
import numpy as np
import jax
import jax.numpy as jnp
from jax.experimental import pallas as pl
from jax.experimental.pallas import tpu as pltpu


def _round_up(x, m):
    return ((x + m - 1) // m) * m


def mean_pool_kernel(wt_ref, wb_ref, vals_ref, mol_idx_ref, inv_n_ref, out_ref):
    """One grid step = one (atom-tile, molecule-band) work item.

    wt_ref      : [W]         i32 SMEM  atom-tile index per work item (prefetched)
    wb_ref      : [W]         i32 SMEM  molecule-band index per work item (prefetched)
    vals_ref    : [K, A_TILE] f32  per-key per-atom scalars for this atom tile
    mol_idx_ref : [A_TILE, 1] i32  molecule id per atom (-1 for pad atoms)
    inv_n_ref   : [1, M_BAND] f32  1/num_atoms for this molecule band (0 for empties)
    out_ref     : [K, M_BAND] f32  pooled means for this band (VMEM-resident accumulator)
    """
    w = pl.program_id(0)
    nw = pl.num_programs(0)
    band = wb_ref[w]
    prev_band = wb_ref[jnp.maximum(w - 1, 0)]
    next_band = wb_ref[jnp.minimum(w + 1, nw - 1)]
    is_first = jnp.logical_or(w == 0, band != prev_band)
    is_last = jnp.logical_or(w == nw - 1, band != next_band)

    @pl.when(is_first)
    def _():
        out_ref[...] = jnp.zeros_like(out_ref)

    a_tile = mol_idx_ref.shape[0]
    m_band = out_ref.shape[1]

    # One-hot segment mask restricted to this molecule band:
    #   mask[a, j] = (mol_idx[a] == band * M_BAND + j)
    # Pad atoms (mol_idx == -1) and atoms outside the band never match.
    mol_iota = jax.lax.broadcasted_iota(jnp.int32, (a_tile, m_band), 1)
    mask = (mol_iota == (mol_idx_ref[...] - band * m_band)).astype(jnp.float32)

    # scatter_add as an MXU matmul with molecules lane-dense on the N axis.
    out_ref[...] += jnp.dot(vals_ref[...], mask,
                            preferred_element_type=jnp.float32)

    @pl.when(is_last)
    def _():
        out_ref[...] = out_ref[...] * inv_n_ref[...]


def pallas_segment_mean_multi(vals, mol_idx, num_atoms_per_mol, *,
                              max_atom_tile=4096, m_band=None,
                              vmem_limit_bytes=48 * 1024 * 1024):
    """Fused segment-mean of K per-atom value rows.

    vals: [K, A] f32 (device), mol_idx: [A] int (host, sorted ascending),
    num_atoms_per_mol: [M] (host).
    Returns [K, M] f32 where out[k, m] = sum(vals[k, mol_idx == m]) / N[m]
    (0 for molecules with N[m] == 0).
    """
    vals = jnp.asarray(vals, jnp.float32)
    K, A = vals.shape
    mol_idx = np.asarray(mol_idx, np.int32)
    n = np.asarray(num_atoms_per_mol, np.float64)
    M = int(n.shape[0])

    if M == 0:
        return jnp.zeros((K, 0), jnp.float32)
    if A == 0 or K == 0:
        return jnp.zeros((K, M), jnp.float32)

    # Molecule band width (MXU N axis): 128 minimum, 256 fills v6e/v7x MXUs.
    if m_band is None:
        m_band = min(256, _round_up(M, 128))
    M_pad = _round_up(M, m_band)
    n_bands = M_pad // m_band

    # Atom tile: lane-aligned, large enough to amortize per-step overhead while
    # keeping the per-step [A_TILE, M_BAND] mask (+ iota temp) small in VMEM.
    a_tile = int(min(max_atom_tile, _round_up(A, 128)))
    A_pad = _round_up(A, a_tile)
    n_tiles = A_pad // a_tile

    # ---- host-side work list. mol_idx is sorted, so each atom tile touches a
    # contiguous range of molecule bands; one work item = (atom_tile, band),
    # ordered by band so each output band is visited in one contiguous run.
    tile_lo = np.empty(n_tiles, np.int64)
    tile_hi = np.empty(n_tiles, np.int64)
    for t in range(n_tiles):
        s = t * a_tile
        e = min(s + a_tile, A)
        tile_lo[t] = mol_idx[s] // m_band
        tile_hi[t] = mol_idx[e - 1] // m_band
    wt_list, wb_list = [], []
    for b in range(n_bands):
        ts = np.nonzero((tile_lo <= b) & (tile_hi >= b))[0]
        if ts.size == 0:
            # Band of empty molecules: visit once so its output is zeroed.
            wt_list.append(0)
            wb_list.append(b)
        else:
            for t in ts:
                wt_list.append(int(t))
                wb_list.append(b)
    work_tile = jnp.asarray(np.asarray(wt_list, np.int32))
    work_band = jnp.asarray(np.asarray(wb_list, np.int32))
    n_work = len(wt_list)

    # ---- padded device operands (single-op pad / host-built arrays).
    vals_pad = jnp.pad(vals, ((0, 0), (0, A_pad - A)))
    mol_idx_pad_np = np.full((A_pad, 1), -1, np.int32)
    mol_idx_pad_np[:A, 0] = mol_idx
    mol_idx_pad = jnp.asarray(mol_idx_pad_np)
    inv_n_np = np.zeros((1, M_pad), np.float32)
    inv_n_np[0, :M] = np.where(n > 0, 1.0 / np.maximum(n, 1.0), 0.0)
    inv_n = jnp.asarray(inv_n_np)

    out = pl.pallas_call(
        mean_pool_kernel,
        out_shape=jax.ShapeDtypeStruct((K, M_pad), jnp.float32),
        grid_spec=pltpu.PrefetchScalarGridSpec(
            num_scalar_prefetch=2,
            grid=(n_work,),
            in_specs=[
                pl.BlockSpec((K, a_tile), lambda w, wt, wb: (0, wt[w])),   # values
                pl.BlockSpec((a_tile, 1), lambda w, wt, wb: (wt[w], 0)),   # mol ids
                pl.BlockSpec((1, m_band), lambda w, wt, wb: (0, wb[w])),   # 1/N band
            ],
            out_specs=pl.BlockSpec((K, m_band), lambda w, wt, wb: (0, wb[w])),
        ),
        compiler_params=pltpu.CompilerParams(
            dimension_semantics=("arbitrary",),   # sequential work list (reduction)
            vmem_limit_bytes=vmem_limit_bytes,
        ),
    )(work_tile, work_band, vals_pad, mol_idx_pad, inv_n)
    return out[:, :M]


def mean_pool_forward(batch, xyz, r_ij, nbrs, atomwise_output, grad_keys, out_keys=None):
    """JAX/Pallas equivalent of MeanPool.forward (== sum_and_grad with mean=True)."""
    N = np.asarray(batch["num_atoms"], dtype=np.int64)
    n_mol = len(N)
    total_atoms = int(N.sum())
    mol_idx = np.repeat(np.arange(n_mol, dtype=np.int32), N)

    if out_keys is None:
        out_keys = list(atomwise_output.keys())

    # Reduce every atomwise output to one scalar per atom in the wrapper (so the
    # kernel operand is lane-dense), then fuse every key into a single call.
    keys, rows = [], []
    for key, val in atomwise_output.items():
        if key not in out_keys:
            continue
        val = jnp.asarray(val, jnp.float32)
        if val.reshape(-1).shape[0] == total_atoms:
            use_val = val.reshape(-1)        # one scalar per atom
        elif val.shape[0] == total_atoms:
            use_val = val.sum(-1)            # per-atom feature vector -> sum(-1)
        else:
            raise Exception(f"Don't know how to handle val shape {val.shape} for key {key}")
        keys.append(key)
        rows.append(use_val)

    results = {}
    if keys:
        stacked = jnp.stack(rows, axis=0)                                  # [K, A]
        pooled = pallas_segment_mean_multi(stacked, mol_idx, N)            # [K, M]
        for i, key in enumerate(keys):
            results[key] = pooled[i]

    # TODO(synk): grad_keys (e.g. 'energy_grad', 'stress') require autograd w.r.t.
    # xyz / r_ij through the model that produced atomwise_output; not computable
    # from precomputed arrays, so they are skipped here.
    return results


if __name__ == "__main__":
    key = jax.random.PRNGKey(0)
    k1, k2, k3, k4, k5 = jax.random.split(key, 5)

    # ---- case 1: small end-to-end forward (2 molecules: 5 and 3 atoms) ----
    N = np.array([5, 3], dtype=np.int64)
    total_atoms = int(N.sum())

    batch = {"num_atoms": N}
    xyz = jax.random.normal(k1, (total_atoms, 3), jnp.float32)
    nbrs = jnp.zeros((4, 2), jnp.int32)
    r_ij = jax.random.normal(k2, (4, 3), jnp.float32)

    atomwise_output = {
        "energy": jax.random.normal(k3, (total_atoms, 1), jnp.float32),  # flat branch
        "dipole": jax.random.normal(k4, (total_atoms, 4), jnp.float32),  # sum(-1) branch
    }

    results = mean_pool_forward(batch, xyz, r_ij, nbrs, atomwise_output, grad_keys=[])
    jax.block_until_ready(results)

    mol_idx = np.repeat(np.arange(len(N)), N)
    for key_name, val in atomwise_output.items():
        v = np.asarray(val)
        uv = v.reshape(-1) if v.reshape(-1).shape[0] == total_atoms else v.sum(-1)
        ref = np.array([uv[mol_idx == m].sum() / N[m] for m in range(len(N))],
                       dtype=np.float32)
        got = np.asarray(results[key_name])
        assert got.shape == ref.shape, (got.shape, ref.shape)
        np.testing.assert_allclose(got, ref, rtol=1e-5, atol=1e-5)

    # ---- case 2: exercise multi-tile / multi-band path (incl. empty molecules,
    # atom tiles that straddle a molecule-band boundary) ----
    M2 = 300
    N2 = (np.arange(M2) % 5).astype(np.int64)            # contains zero-atom molecules
    A2 = int(N2.sum())
    mol_idx2 = np.repeat(np.arange(M2, dtype=np.int32), N2)
    K2 = 3
    vals2 = jax.random.normal(k5, (K2, A2), jnp.float32)
    pooled2 = pallas_segment_mean_multi(vals2, mol_idx2, N2,
                                        max_atom_tile=256, m_band=128)
    jax.block_until_ready(pooled2)

    v2 = np.asarray(vals2)
    ref2 = np.zeros((K2, M2), np.float32)
    for m in range(M2):
        if N2[m] > 0:
            ref2[:, m] = v2[:, mol_idx2 == m].sum(-1) / N2[m]
    got2 = np.asarray(pooled2)
    assert got2.shape == ref2.shape, (got2.shape, ref2.shape)
    np.testing.assert_allclose(got2, ref2, rtol=1e-5, atol=1e-5)

    print("KERNEL_OK")
</pallas_src>

<mosaic_0001>
module attributes {stable_mosaic.version = 11 : i64} {
  func.func @mean_pool_kernel(%arg0: i32, %arg1: memref<1xi32, #tpu.memory_space<smem>>, %arg2: memref<1xi32, #tpu.memory_space<smem>>, %arg3: memref<2x128xf32, #tpu.memory_space<vmem>>, %arg4: memref<128x1xi32, #tpu.memory_space<vmem>>, %arg5: memref<1x128xf32, #tpu.memory_space<vmem>>, %arg6: memref<2x128xf32, #tpu.memory_space<vmem>>) attributes {dimension_semantics = [#tpu.dimension_semantics<arbitrary>], iteration_bounds = array<i64: 1>, scalar_prefetch = 2 : i64, scratch_operands = 0 : i64, tpu.core_type = #tpu.core_type<tc>, window_params = [{transform_indices = @transform_0, window_bounds = array<i64: 2, 128>}, {transform_indices = @transform_1, window_bounds = array<i64: 128, 1>}, {transform_indices = @transform_2, window_bounds = array<i64: 1, 128>}, {transform_indices = @transform_3, window_bounds = array<i64: 2, 128>}]} {
    %0 = arith.index_cast %arg0 : i32 to index
    %1 = memref.load %arg2[%0] : memref<1xi32, #tpu.memory_space<smem>>
    %c1_i32 = arith.constant 1 : i32
    %2 = arith.subi %arg0, %c1_i32 : i32
    %c0_i32 = arith.constant 0 : i32
    %3 = arith.maxsi %2, %c0_i32 : i32
    %4 = arith.index_cast %3 : i32 to index
    %5 = memref.load %arg2[%4] : memref<1xi32, #tpu.memory_space<smem>>
    %c1_i32_0 = arith.constant 1 : i32
    %6 = arith.addi %arg0, %c1_i32_0 : i32
    %c0_i32_1 = arith.constant 0 : i32
    %7 = arith.minsi %6, %c0_i32_1 : i32
    %8 = arith.index_cast %7 : i32 to index
    %9 = memref.load %arg2[%8] : memref<1xi32, #tpu.memory_space<smem>>
    %c0_i32_2 = arith.constant 0 : i32
    %10 = arith.cmpi eq, %arg0, %c0_i32_2 : i32
    %11 = arith.cmpi ne, %1, %5 : i32
    %12 = arith.ori %10, %11 : i1
    %c0_i32_3 = arith.constant 0 : i32
    %13 = arith.cmpi eq, %arg0, %c0_i32_3 : i32
    %14 = arith.cmpi ne, %1, %9 : i32
    %15 = arith.ori %13, %14 : i1
    %16 = arith.extui %12 : i1 to i32
    %c0_i32_4 = arith.constant 0 : i32
    %17 = arith.cmpi ne, %16, %c0_i32_4 : i32
    scf.if %17 {
      %cst_13 = arith.constant 0.000000e+00 : f32
      %34 = vector.broadcast %cst_13 : f32 to vector<2x128xf32>
      %c0_14 = arith.constant 0 : index
      %c0_15 = arith.constant 0 : index
      %35 = vector.load %arg6[%c0_14, %c0_15] : memref<2x128xf32, #tpu.memory_space<vmem>>, vector<2x128xf32>
      tpu.vector_store %arg6[%c0_14, %c0_15], %34 {strides = array<i32>} : memref<2x128xf32, #tpu.memory_space<vmem>>, vector<2x128xf32>,
    } else {
    }
    %18 = tpu.iota {dimensions = array<i32: 1>} : vector<128x128xi32>
    %c0 = arith.constant 0 : index
    %c0_5 = arith.constant 0 : index
    %19 = vector.load %arg4[%c0, %c0_5] : memref<128x1xi32, #tpu.memory_space<vmem>>, vector<128x1xi32>
    %c128_i32 = arith.constant 128 : i32
    %20 = arith.muli %1, %c128_i32 : i32
    %21 = vector.broadcast %20 : i32 to vector<128x1xi32>
    %22 = arith.subi %19, %21 : vector<128x1xi32>
    %23 = vector.broadcast %22 : vector<128x1xi32> to vector<128x128xi32>
    %24 = arith.cmpi eq, %18, %23 : vector<128x128xi32>
    %25 = arith.extui %24 : vector<128x128xi1> to vector<128x128xi32>
    %26 = arith.sitofp %25 : vector<128x128xi32> to vector<128x128xf32>
    %c0_6 = arith.constant 0 : index
    %c0_7 = arith.constant 0 : index
    %27 = vector.load %arg6[%c0_6, %c0_7] : memref<2x128xf32, #tpu.memory_space<vmem>>, vector<2x128xf32>
    %c0_8 = arith.constant 0 : index
    %c0_9 = arith.constant 0 : index
    %28 = vector.load %arg3[%c0_8, %c0_9] : memref<2x128xf32, #tpu.memory_space<vmem>>, vector<2x128xf32>
    %cst = arith.constant dense<0.000000e+00> : vector<2x128xf32>
    %29 = tpu.matmul %28, %26, %cst {dimension_numbers = #tpu.dot_dimension_numbers<[1], [0], [0], [1], [0, 0, 1, 1], [], []>} : vector<2x128xf32>, vector<128x128xf32>, vector<2x128xf32> -> vector<2x128xf32>
    %30 = arith.addf %27, %29 : vector<2x128xf32>
    %c0_10 = arith.constant 0 : index
    %c0_11 = arith.constant 0 : index
    %31 = vector.load %arg6[%c0_10, %c0_11] : memref<2x128xf32, #tpu.memory_space<vmem>>, vector<2x128xf32>
    tpu.vector_store %arg6[%c0_10, %c0_11], %30 {strides = array<i32>} : memref<2x128xf32, #tpu.memory_space<vmem>>, vector<2x128xf32>,
    %32 = arith.extui %15 : i1 to i32
    %c0_i32_12 = arith.constant 0 : i32
    %33 = arith.cmpi ne, %32, %c0_i32_12 : i32
    scf.if %33 {
      %c0_13 = arith.constant 0 : index
      %c0_14 = arith.constant 0 : index
      %34 = vector.load %arg6[%c0_13, %c0_14] : memref<2x128xf32, #tpu.memory_space<vmem>>, vector<2x128xf32>
      %c0_15 = arith.constant 0 : index
      %c0_16 = arith.constant 0 : index
      %35 = vector.load %arg5[%c0_15, %c0_16] : memref<1x128xf32, #tpu.memory_space<vmem>>, vector<1x128xf32>
      %36 = vector.broadcast %35 : vector<1x128xf32> to vector<2x128xf32>
      %37 = arith.mulf %34, %36 : vector<2x128xf32>
      %c0_17 = arith.constant 0 : index
      %c0_18 = arith.constant 0 : index
      %38 = vector.load %arg6[%c0_17, %c0_18] : memref<2x128xf32, #tpu.memory_space<vmem>>, vector<2x128xf32>
      tpu.vector_store %arg6[%c0_17, %c0_18], %37 {strides = array<i32>} : memref<2x128xf32, #tpu.memory_space<vmem>>, vector<2x128xf32>,
    } else {
    }
    return
  }
  func.func @transform_0(%arg0: i32, %arg1: memref<1xi32, #tpu.memory_space<smem>>, %arg2: memref<1xi32, #tpu.memory_space<smem>>) -> (i32, i32) {
    %0 = arith.index_cast %arg0 : i32 to index
    %1 = memref.load %arg1[%0] : memref<1xi32, #tpu.memory_space<smem>>
    %c0_i32 = arith.constant 0 : i32
    %c0_i32_0 = arith.constant 0 : i32
    return %c0_i32, %1 : i32, i32
  }
  func.func @transform_1(%arg0: i32, %arg1: memref<1xi32, #tpu.memory_space<smem>>, %arg2: memref<1xi32, #tpu.memory_space<smem>>) -> (i32, i32) {
    %0 = arith.index_cast %arg0 : i32 to index
    %1 = memref.load %arg1[%0] : memref<1xi32, #tpu.memory_space<smem>>
    %c0_i32 = arith.constant 0 : i32
    %c0_i32_0 = arith.constant 0 : i32
    return %1, %c0_i32 : i32, i32
  }
  func.func @transform_2(%arg0: i32, %arg1: memref<1xi32, #tpu.memory_space<smem>>, %arg2: memref<1xi32, #tpu.memory_space<smem>>) -> (i32, i32) {
    %0 = arith.index_cast %arg0 : i32 to index
    %1 = memref.load %arg2[%0] : memref<1xi32, #tpu.memory_space<smem>>
    %c0_i32 = arith.constant 0 : i32
    %c0_i32_0 = arith.constant 0 : i32
    return %c0_i32, %1 : i32, i32
  }
  func.func @transform_3(%arg0: i32, %arg1: memref<1xi32, #tpu.memory_space<smem>>, %arg2: memref<1xi32, #tpu.memory_space<smem>>) -> (i32, i32) {
    %0 = arith.index_cast %arg0 : i32 to index
    %1 = memref.load %arg2[%0] : memref<1xi32, #tpu.memory_space<smem>>
    %c0_i32 = arith.constant 0 : i32
    %c0_i32_0 = arith.constant 0 : i32
    return %c0_i32, %1 : i32, i32
  }
}

</mosaic_0001>

<bundles_post_ra>
// kernel: tpu_custom_call.1
= control target key start
LH: loop header
LB: loop body
LE: loop exit
PB: predicated region body
PF: predicated region fallthrough
CT: control target
= control target key end

     0   :  { %s455_s0 = inlined_call_operand.<no memory space> [shape: s32[1], index: 0, kind: input, shape index: {}]   ;;  %s456_s1 = inlined_call_operand.<no memory space> [shape: s32[1], index: 1, kind: input, shape index: {}]   ;;  %s457_s2 = inlined_call_operand.vmem [shape: f32[2,128], index: 2, kind: input, shape index: {}]   ;;  %s458_s3 = inlined_call_operand.vmem [shape: s32[128,1], index: 3, kind: input, shape index: {}]   ;;  %s459_s4 = inlined_call_operand.vmem [shape: f32[1,128], index: 4, kind: input, shape index: {}]   ;;  %s460_s5 = inlined_call_operand.hbm [shape: f32[2,128], index: 5, kind: output, shape index: {}]  }
   0x1   :  { %s294_s20 = sshll.u32 %s455_s0, 4 }
   0x2   :  { %12 = vsyncpa [#allocation6], 0  ;;  %v364_v0 = vmov 0   ;;  %p61_p0 = scmp.lt.s32.totalorder %s294_s20, 15  ;;  %s296_s23 = sshll.u32 %s456_s1, 7  ;;  %v91_v34 = vlaneseq  ;;  %v365_v39 = vmov 1.0  }
   0x3   :  { %336 = vset.pattern.permute.xlu2 %v364_v0  ;;  %335 = vset.pattern.permute.xlu1 %v364_v0  ;;  %v110_v1 = vstv %s296_s23  ;;  %v366_v43 = vmov 0.0   ;;  %p54_p1 = scmp.lt.s32.totalorder %s455_s0, 0  ;;  %p68_p2 = scmp.lt.s32.totalorder %s456_s1, 0 }
   0x4   :  { %334 = vset.pattern.permute.xlu0 %v364_v0  ;;  %s462_s20 = smov (!%p61_p0, %s294_s20), 15  ;;  %v92_v36 = vand.u32 127, %v91_v34  ;;  %90 = vst [vmem:[#allocation5] sm:$0x3] %v366_v43  ;;  %s329_s18 = sshll.u32 %s456_s1, 1 }
   0x5   :  { %s295_s24 = sshll.u32 %s462_s20, 3  ;;  %s464_s0 = smov (!%p54_p1, %s455_s0), 0 }
   0x6   :  { %s407_s27 = scalar_lea.vmem %s458_s3, %s295_s24  ;;  %s293_s6 = sshll.u32 %s464_s0, 1 }
   0x7   :  { %v108_v2 = vld [vmem:[%s407_s27 + $0x78] sm:$0xff]  ;;  %v106_v3 = vld [vmem:[%s407_s27 + $0x68] sm:$0xff]  ;;  %v107_v8 = vld [vmem:[%s407_s27 + $0x70] sm:$0xff]  ;;  %s57_s9 = scalar_lea.vmem %s457_s2, %s293_s6  ;;  %s263_s21 = scalar_lea.hbm %s460_s5, %s329_s18 }
   0x8   :  { %v104_v4 = vld [vmem:[%s407_s27 + $0x58] sm:$0xff]  ;;  %v126_v5 = vsub.s32 %v108_v2, %v110_v1  ;;  %v124_v6 = vsub.s32 %v106_v3, %v110_v1  ;;  %v105_v9 = vld [vmem:[%s407_s27 + $0x60] sm:$0xff]  ;;  %v103_v10 = vld [vmem:[%s407_s27 + $0x50] sm:$0xff]  ;;  %v125_v11 = vsub.s32 %v107_v8, %v110_v1  ;;  %s69_s0 = scalar_select %p68_p2, %s456_s1, 0 }
   0x9   :  { %v122_v7 = vsub.s32 %v104_v4, %v110_v1  ;;  %v123_v12 = vsub.s32 %v105_v9, %v110_v1  ;;  %v121_v13 = vsub.s32 %v103_v10, %v110_v1  ;;  %v102_v14 = vld [vmem:[%s407_s27 + $0x48] sm:$0xff]  ;;  %v101_v15 = vld [vmem:[%s407_s27 + $0x40] sm:$0xff]  ;;  %v100_v16 = vld [vmem:[%s407_s27 + $0x38] sm:$0xff]  ;;  %s367_s22 = smov [#allocation5]   ;;  %s267_s24 = sshll.u32 %s263_s21, 4  ;;  %s268_s24 = int_to_ptr.hbm [resolvable:$true] %s267_s24 }
   0xa   :  { %173 = vperm.xlu0 %334, %v126_v5   ;;  %167 = vperm.xlu1 %335, %v124_v6   ;;  %v120_v17 = vsub.s32 %v102_v14, %v110_v1  ;;  %v119_v18 = vsub.s32 %v101_v15, %v110_v1  ;;  %v118_v19 = vsub.s32 %v100_v16, %v110_v1  ;;  %v99_v20 = vld [vmem:[%s407_s27 + $0x30] sm:$0xff]  ;;  %v98_v21 = vld [vmem:[%s407_s27 + $0x28] sm:$0xff]  ;;  %v97_v22 = vld [vmem:[%s407_s27 + $0x20] sm:$0xff]  ;;  %s70_s16 = scalar_lea.vmem %s459_s4, %s69_s0  ;;  %s265_s23 = sshll.u32 %s367_s22, 4  ;;  %s266_s23 = int_to_ptr.vmem [resolvable:$true] %s265_s23 }
   0xb   :  { %161 = vperm.xlu2 %336, %v122_v7   ;;  %v117_v23 = vsub.s32 %v99_v20, %v110_v1  ;;  %v116_v24 = vsub.s32 %v98_v21, %v110_v1  ;;  %v115_v25 = vsub.s32 %v97_v22, %v110_v1  ;;  %v96_v26 = vld [vmem:[%s407_s27 + $0x18] sm:$0xff]  ;;  %v95_v27 = vld [vmem:[%s407_s27 + $0x10] sm:$0xff]  ;;  %v94_v28 = vld [vmem:[%s407_s27 + $0x8] sm:$0xff]  ;;  %s350_s4 = sshra.s32 %s268_s24, 4  ;;  %s351_s4 = int_to_ptr.hbm [resolvable:$true] %s350_s4 }
   0xc   :  { %v114_v29 = vsub.s32 %v96_v26, %v110_v1  ;;  %v113_v30 = vsub.s32 %v95_v27, %v110_v1  ;;  %v112_v31 = vsub.s32 %v94_v28, %v110_v1  ;;  %v93_v32 = vld [vmem:[%s407_s27] sm:$0xff]  ;;  %s352_s25 = scalar_lea.hbm %s351_s4, 2  ;;  %s354_s27 = scalar_lea.hbm %s460_s5, 2 }
   0xd   :  { %v111_v33 = vsub.s32 %v93_v32, %v110_v1  ;;  %v224_v54 = vld [vmem:[%s57_s9] sm:$0x3]  ;;  %p353_p3 = scmp.ne.s32.totalorder %s351_s4, %s352_s25  ;;  %p355_p4 = scmp.lt.s32.totalorder %s351_s4, %s460_s5 }
   0xe   :  { %v223_v55 = vld [vmem:[#allocation5] sm:$0x3]  ;;  %p356_p5 = scmp.lt.s32.totalorder %s354_s27, %s352_s25 }
   0xf   :  { %v337_v58 = vld [vmem:[%s70_s16] ss:$0 sm:$0xff] }
  0x10   :  { %p357_p6 = por %p356_p5, %p355_p4 }
  0x12   :  { %170 = vperm.xlu0 %334, %v125_v11   ;;  %164 = vperm.xlu1 %335, %v123_v12   ;;  %p358_p7 = pnand %p357_p6, %p353_p3 }
  0x13   :  { %158 = vperm.xlu2 %336, %v121_v13  }
  0x1a   :  { %155 = vperm.xlu0 %334, %v120_v17   ;;  %152 = vperm.xlu1 %335, %v119_v18  }
  0x1b   :  { %149 = vperm.xlu2 %336, %v118_v19  }
  0x22   :  { %146 = vperm.xlu0 %334, %v117_v23   ;;  %143 = vperm.xlu1 %335, %v116_v24  }
  0x23   :  { %140 = vperm.xlu2 %336, %v115_v25  }
  0x2a   :  { %137 = vperm.xlu0 %334, %v114_v29   ;;  %134 = vperm.xlu1 %335, %v113_v30  }
  0x2b   :  { %131 = vperm.xlu2 %336, %v112_v31  }
  0x32   :  { %128 = vperm.xlu0 %334, %v111_v33  }
  0x65   :  { %v162_v35 = vpop.permute.xlu2 %161 }
  0x66   :  { %vm186_vm4 = vcmp.eq.s32.totalorder %v92_v36, %v162_v35 }
  0x6d   :  { %v159_v40 = vpop.permute.xlu2 %158 }
  0x6e   :  { %vm185_vm5 = vcmp.eq.s32.totalorder %v92_v36, %v159_v40 }
  0x75   :  { %v150_v44 = vpop.permute.xlu2 %149 }
  0x76   :  { %vm182_vm8 = vcmp.eq.s32.totalorder %v92_v36, %v150_v44 }
  0x7c   :  { %v174_v37 = vpop.permute.xlu0 %173  ;;  %v168_v38 = vpop.permute.xlu1 %167 }
  0x7d   :  { %vm190_vm0 = vcmp.eq.s32.totalorder %v92_v36, %v174_v37  ;;  %vm188_vm2 = vcmp.eq.s32.totalorder %v92_v36, %v168_v38  ;;  %v141_v47 = vpop.permute.xlu2 %140 }
  0x7e   :  { %313 = vmatpush.msk.msra.mxu0 %vm190_vm0, %v365_v39  ;;  %vm179_vm11 = vcmp.eq.s32.totalorder %v92_v36, %v141_v47 }
  0x84   :  { %v171_v41 = vpop.permute.xlu0 %170  ;;  %v165_v42 = vpop.permute.xlu1 %164 }
  0x85   :  { %vm189_vm1 = vcmp.eq.s32.totalorder %v92_v36, %v171_v41  ;;  %vm187_vm3 = vcmp.eq.s32.totalorder %v92_v36, %v165_v42  ;;  %v132_v52 = vpop.permute.xlu2 %131 }
  0x86   :  { %314 = vmatpush.msk.msra.mxu0 %vm189_vm1, %v365_v39  ;;  %vm176_vm14 = vcmp.eq.s32.totalorder %v92_v36, %v132_v52 }
  0x88   :  { %315 = vmatpush.msk.msra.mxu0 %vm188_vm2, %v365_v39 }
  0x8a   :  { %316 = vmatpush.msk.msra.mxu0 %vm187_vm3, %v365_v39 }
  0x8c   :  { %317 = vmatpush.msk.msra.mxu0 %vm186_vm4, %v365_v39  ;;  %v156_v45 = vpop.permute.xlu0 %155  ;;  %v153_v46 = vpop.permute.xlu1 %152 }
  0x8d   :  { %vm184_vm6 = vcmp.eq.s32.totalorder %v92_v36, %v156_v45  ;;  %vm183_vm7 = vcmp.eq.s32.totalorder %v92_v36, %v153_v46 }
  0x8e   :  { %318 = vmatpush.msk.msra.mxu0 %vm185_vm5, %v365_v39 }
  0x90   :  { %319 = vmatpush.msk.msra.mxu0 %vm184_vm6, %v365_v39 }
  0x92   :  { %320 = vmatpush.msk.msra.mxu0 %vm183_vm7, %v365_v39 }
  0x94   :  { %321 = vmatpush.msk.msra.mxu0 %vm182_vm8, %v365_v39  ;;  %v147_v48 = vpop.permute.xlu0 %146  ;;  %v144_v49 = vpop.permute.xlu1 %143 }
  0x95   :  { %vm181_vm9 = vcmp.eq.s32.totalorder %v92_v36, %v147_v48  ;;  %vm180_vm10 = vcmp.eq.s32.totalorder %v92_v36, %v144_v49 }
  0x96   :  { %322 = vmatpush.msk.msra.mxu0 %vm181_vm9, %v365_v39 }
  0x98   :  { %323 = vmatpush.msk.msra.mxu0 %vm180_vm10, %v365_v39 }
  0x9a   :  { %324 = vmatpush.msk.msra.mxu0 %vm179_vm11, %v365_v39 }
  0x9c   :  { %v138_v50 = vpop.permute.xlu0 %137  ;;  %v135_v51 = vpop.permute.xlu1 %134 }
  0x9d   :  { %vm178_vm12 = vcmp.eq.s32.totalorder %v92_v36, %v138_v50  ;;  %vm177_vm13 = vcmp.eq.s32.totalorder %v92_v36, %v135_v51 }
  0x9e   :  { %325 = vmatpush.msk.msra.mxu0 %vm178_vm12, %v365_v39 }
  0xa0   :  { %326 = vmatpush.msk.msra.mxu0 %vm177_vm13, %v365_v39 }
  0xa2   :  { %327 = vmatpush.msk.msra.mxu0 %vm176_vm14, %v365_v39 }
  0xa4   :  { %v129_v53 = vpop.permute.xlu0 %128 }
  0xa5   :  { %vm175_vm15 = vcmp.eq.s32.totalorder %v92_v36, %v129_v53 }
  0xa6   :  { %328 = vmatpush.msk.msra.mxu0 %vm175_vm15, %v365_v39 }
  0xa7   :  { %241 = vmatmul.f32.vlgmr.msra.gmra.mxu0 %v224_v54 }
 0x124   :  { %v242_v56 = vpop.f32.mrf.mxu0 }
 0x125   :  { %v245_v57 = vadd.f32 %v242_v56, %v223_v55 }
 0x127   :  { %246 = vst [vmem:[#allocation5] sm:$0x3] %v245_v57 }
 0x12e   :  { %v250_v59 = vld [vmem:[#allocation5] sm:$0x3] }
 0x12f   :  { %v255_v60 = vmul.f32 %v337_v58, %v250_v59 }
 0x131   :  { %256 = vst [vmem:[#allocation5] sm:$0x3] %v255_v60 }
 0x132   :  { %361 = shalt.err (!%p358_p7)
}
 0x133   :  { %270 = dma.vmem_to_hbm [thread:$0]  %s266_s23, 32, %s268_s24, [#allocation6]  }
 0x134   :  { %362 = dma.done.wait [#allocation6], 32  }
 0x135   :  { %363 = vsyncadd [#allocation6], 4294967264 }
 0x136   :  { %275 = vsyncpa [#allocation6], 1 }

</bundles_post_ra>
